<compile_context>
chip_gen: v5e
topology: v5e:2x2
jax: 0.10.0
libtpu: 0.0.40
codegen_flags: <defaults>
</compile_context>

<pallas_src>
import functools
import math

import jax
import jax.numpy as jnp
import numpy as np
from jax import lax
from jax.experimental import pallas as pl
from jax.experimental.pallas import tpu as pltpu

_LANE = 128
_SUBLANE = 8


def _round_up(x, m):
    return (x + m - 1) // m * m


# -----------------------------------------------------------------------------
# Path A: embedding table resident in VMEM (small / medium vocab fast path).
# -----------------------------------------------------------------------------
def _resident_kernel(ids_ref, table_ref, out_ref, *, scale, tm):
    """ids_ref: SMEM (n_rows,) i32; table_ref: VMEM (V, D); out_ref: VMEM (tm, D)."""
    base = pl.program_id(0) * tm

    def body(r, carry):
        tok = ids_ref[base + r]
        row = table_ref[pl.ds(tok, 1), :]                 # (1, D) dynamic-row read
        out_ref[pl.ds(r, 1), :] = (row * scale).astype(out_ref.dtype)
        return carry

    # Unrolled so the scheduler can interleave id loads / row reads / stores.
    lax.fori_loop(0, tm, body, 0, unroll=min(8, tm))


# -----------------------------------------------------------------------------
# Path B: table in HBM, double-buffered per-row DMA gather (large vocab).
# -----------------------------------------------------------------------------
def _hbm_gather_kernel(ids_ref, emb_hbm, out_ref, rows_vmem, sems, *, scale, tm):
    """ids_ref  : SMEM (n_rows,) i32  -- all (clipped, padded) token ids
       emb_hbm  : HBM  (V, D)         -- unpadded embedding table
       out_ref  : VMEM (tm, D)        -- output tile for this grid step
       rows_vmem: VMEM (2, tm, D)     -- double-buffered gather landing pad
       sems     : DMA sems (2,)       -- one shared semaphore per buffer slot
    """
    i = pl.program_id(0)
    n_steps = pl.num_programs(0)
    slot = i % 2

    def issue_tile(tile_idx, slot_idx):
        base = tile_idx * tm

        def body(r, carry):
            tok = ids_ref[base + r]
            pltpu.make_async_copy(
                emb_hbm.at[pl.ds(tok, 1), :],
                rows_vmem.at[slot_idx, pl.ds(r, 1), :],
                sems.at[slot_idx],
            ).start()
            return carry

        # Unrolled: descriptor issue is scalar/misc-slot bound.
        lax.fori_loop(0, tm, body, 0, unroll=min(8, tm))

    # Prime the pipeline: the first grid step gathers its own tile.
    @pl.when(i == 0)
    def _():
        issue_tile(0, 0)

    # Software pipeline: issue tile i+1's row DMAs into the other slot *before*
    # any .wait() on tile i, so the next tile's HBM round-trip overlaps this
    # tile's waits + scale + output writeback (and SMEM id reads stay ahead of
    # the waits).
    @pl.when(i + 1 < n_steps)
    def _():
        issue_tile(i + 1, 1 - slot)

    # Drain this tile's tm row copies.  All copies on a slot share one DMA
    # semaphore and have identical (1, D) shape, so each wait consumes exactly
    # one copy's worth; the src slice is a placeholder (only dst shape + sem
    # matter for wait -- same pattern as the reference paged-attention kernel).
    @pl.loop(0, tm)
    def _(r):
        pltpu.make_async_copy(
            emb_hbm.at[pl.ds(0, 1), :],
            rows_vmem.at[slot, pl.ds(r, 1), :],
            sems.at[slot],
        ).wait()

    out_ref[...] = (rows_vmem[slot] * scale).astype(out_ref.dtype)


# -----------------------------------------------------------------------------
# Wrapper.
# -----------------------------------------------------------------------------
def _vmem_budget_bytes():
    """Conservative per-core VMEM budget for this kernel's buffers."""
    try:
        cap = pltpu.get_tpu_info().vmem_capacity_bytes
    except Exception:
        cap = 64 << 20          # v7x per-core physical ceiling; most conservative
    return int(min(cap // 2, 48 << 20))


def word_embeddings(x_ids, emb_table, *, tm=512, force_hbm_gather=False,
                    vmem_table_budget_bytes=24 << 20):
    """x_ids: (B, S) int token ids; emb_table: (V, D) -> (B, S, D) * sqrt(D)."""
    B, S = x_ids.shape
    V, D = emb_table.shape
    scale = float(math.sqrt(D))
    dtype = emb_table.dtype
    itemsize = jnp.dtype(dtype).itemsize

    n_tok = B * S
    # int32[n] scalar prefetch pads to next_pow2(4n) bytes of SMEM; guard it.
    if n_tok > (1 << 17):
        raise ValueError(
            "word_embeddings: too many tokens for whole-array scalar prefetch; "
            "chunk the call over <=131072-token blocks")

    # Physical footprint of padded (8,128)-tiled buffers, for budgeting only
    # (the table itself is never padded).
    d_phys = _round_up(D, _LANE)
    table_phys = _round_up(V, _SUBLANE) * d_phys * itemsize
    resident = (not force_hbm_gather) and table_phys <= vmem_table_budget_bytes

    budget = _vmem_budget_bytes()

    def vmem_est(t):
        out_bufs = 2 * t * d_phys * itemsize                # double-buffered out tile
        staging = 0 if resident else 2 * t * d_phys * itemsize
        return out_bufs + staging + (table_phys if resident else 0)

    # Tokens per grid step: biggest tile that fits the budget, but keep >= 2
    # grid steps when possible (v7x megacore / pipeline startup).
    tm_eff = max(_SUBLANE, min(tm, _round_up(n_tok, _SUBLANE)))
    while tm_eff > _SUBLANE and pl.cdiv(n_tok, tm_eff) < 2:
        tm_eff = _round_up(tm_eff // 2, _SUBLANE)
    while tm_eff > _SUBLANE and vmem_est(tm_eff) > budget:
        tm_eff = _round_up(tm_eff // 2, _SUBLANE)

    n_rows = _round_up(n_tok, tm_eff)
    grid = (n_rows // tm_eff,)

    # Clip for defined gather semantics (every DMA / row read stays in bounds);
    # pad the tail with id 0.  NOTE: PyTorch nn.Embedding raises on OOB ids.
    ids_flat = jnp.clip(x_ids.reshape(n_tok).astype(jnp.int32), 0, V - 1)
    if n_rows != n_tok:
        ids_flat = jnp.concatenate(
            [ids_flat, jnp.zeros((n_rows - n_tok,), jnp.int32)])

    vmem_limit = int(max(32 << 20, min(budget, vmem_est(tm_eff) + (4 << 20))))

    if resident:
        out = pl.pallas_call(
            functools.partial(_resident_kernel, scale=scale, tm=tm_eff),
            out_shape=jax.ShapeDtypeStruct((n_rows, D), dtype),
            grid_spec=pltpu.PrefetchScalarGridSpec(
                num_scalar_prefetch=1,                       # ids -> SMEM
                grid=grid,
                in_specs=[
                    # Constant block index: table DMA'd to VMEM once, resident
                    # across the whole grid.
                    pl.BlockSpec((V, D), lambda i, ids: (0, 0)),
                ],
                out_specs=pl.BlockSpec((tm_eff, D), lambda i, ids: (i, 0)),
            ),
            compiler_params=pltpu.CompilerParams(
                dimension_semantics=("parallel",),           # steps independent
                vmem_limit_bytes=vmem_limit),
        )(ids_flat, emb_table)
    else:
        out = pl.pallas_call(
            functools.partial(_hbm_gather_kernel, scale=scale, tm=tm_eff),
            out_shape=jax.ShapeDtypeStruct((n_rows, D), dtype),
            grid_spec=pltpu.PrefetchScalarGridSpec(
                num_scalar_prefetch=1,                       # ids -> SMEM
                grid=grid,
                in_specs=[
                    pl.BlockSpec(memory_space=pl.ANY),       # table stays in HBM
                ],
                out_specs=pl.BlockSpec((tm_eff, D), lambda i, ids: (i, 0)),
                scratch_shapes=[
                    pltpu.VMEM((2, tm_eff, D), dtype),       # double-buffered rows
                    pltpu.SemaphoreType.DMA((2,)),           # one sem per slot
                ],
            ),
            compiler_params=pltpu.CompilerParams(
                # Cross-step DMA pipelining (prime at step 0, prefetch i+1)
                # requires sequential grid execution.
                dimension_semantics=("arbitrary",),
                vmem_limit_bytes=vmem_limit),
        )(ids_flat, emb_table)

    return out[:n_tok, :].reshape(B, S, D)


if __name__ == "__main__":
    d_model = 32
    vocab_size = 64
    B, S = 2, 8

    key = jax.random.PRNGKey(0)
    k_emb, k_ids = jax.random.split(key)

    # nn.Embedding default init: weight ~ N(0, 1)
    emb_table = jax.random.normal(k_emb, (vocab_size, d_model), dtype=jnp.float32)
    x_ids = jax.random.randint(k_ids, (B, S), 0, vocab_size, dtype=jnp.int32)

    # Pure-JAX reference: lut(x) * sqrt(d_model)
    ref = jnp.take(emb_table, x_ids, axis=0) * math.sqrt(d_model)

    # Path A: small vocab -> VMEM-resident table fast path.
    out_resident = jax.block_until_ready(word_embeddings(x_ids, emb_table))
    assert out_resident.shape == (B, S, d_model), out_resident.shape
    np.testing.assert_allclose(np.asarray(out_resident), np.asarray(ref),
                               rtol=1e-5, atol=1e-5)

    # Path B: force the large-vocab HBM-gather path (double-buffered row DMAs).
    out_hbm = jax.block_until_ready(
        word_embeddings(x_ids, emb_table, force_hbm_gather=True))
    assert out_hbm.shape == (B, S, d_model), out_hbm.shape
    np.testing.assert_allclose(np.asarray(out_hbm), np.asarray(ref),
                               rtol=1e-5, atol=1e-5)

    print("KERNEL_OK")
</pallas_src>

<mosaic_0001>
module attributes {stable_mosaic.version = 11 : i64} {
  func.func @_resident_kernel(%arg0: i32, %arg1: memref<16xi32, #tpu.memory_space<smem>>, %arg2: memref<64x32xf32, #tpu.memory_space<vmem>>, %arg3: memref<8x32xf32, #tpu.memory_space<vmem>>) attributes {dimension_semantics = [#tpu.dimension_semantics<parallel>], iteration_bounds = array<i64: 2>, scalar_prefetch = 1 : i64, scratch_operands = 0 : i64, tpu.core_type = #tpu.core_type<tc>, window_params = [{pipeline_mode = #tpu.pipeline_mode<synchronous>, transform_indices = @transform_0, window_bounds = array<i64: 64, 32>}, {transform_indices = @transform_1, window_bounds = array<i64: 8, 32>}]} {
    %c8_i32 = arith.constant 8 : i32
    %0 = arith.muli %arg0, %c8_i32 : i32
    %c0_i32 = arith.constant 0 : i32
    %1 = arith.addi %0, %c0_i32 : i32
    %2 = arith.index_cast %1 : i32 to index
    %3 = memref.load %arg1[%2] : memref<16xi32, #tpu.memory_space<smem>>
    %4 = arith.index_cast %3 : i32 to index
    %c0 = arith.constant 0 : index
    %5 = vector.load %arg2[%4, %c0] : memref<64x32xf32, #tpu.memory_space<vmem>>, vector<1x32xf32>
    %cst = arith.constant 5.65685415 : f32
    %6 = vector.broadcast %cst : f32 to vector<1x32xf32>
    %7 = arith.mulf %5, %6 : vector<1x32xf32>
    %8 = arith.index_cast %c0_i32 : i32 to index
    %c0_0 = arith.constant 0 : index
    %9 = vector.load %arg3[%8, %c0_0] : memref<8x32xf32, #tpu.memory_space<vmem>>, vector<1x32xf32>
    tpu.vector_store %arg3[%8, %c0_0], %7 {strides = array<i32>} : memref<8x32xf32, #tpu.memory_space<vmem>>, vector<1x32xf32>,
    %c1_i32 = arith.constant 1 : i32
    %10 = arith.addi %0, %c1_i32 : i32
    %11 = arith.index_cast %10 : i32 to index
    %12 = memref.load %arg1[%11] : memref<16xi32, #tpu.memory_space<smem>>
    %13 = arith.index_cast %12 : i32 to index
    %c0_1 = arith.constant 0 : index
    %14 = vector.load %arg2[%13, %c0_1] : memref<64x32xf32, #tpu.memory_space<vmem>>, vector<1x32xf32>
    %cst_2 = arith.constant 5.65685415 : f32
    %15 = vector.broadcast %cst_2 : f32 to vector<1x32xf32>
    %16 = arith.mulf %14, %15 : vector<1x32xf32>
    %17 = arith.index_cast %c1_i32 : i32 to index
    %c0_3 = arith.constant 0 : index
    %18 = vector.load %arg3[%17, %c0_3] : memref<8x32xf32, #tpu.memory_space<vmem>>, vector<1x32xf32>
    tpu.vector_store %arg3[%17, %c0_3], %16 {strides = array<i32>} : memref<8x32xf32, #tpu.memory_space<vmem>>, vector<1x32xf32>,
    %c2_i32 = arith.constant 2 : i32
    %19 = arith.addi %0, %c2_i32 : i32
    %20 = arith.index_cast %19 : i32 to index
    %21 = memref.load %arg1[%20] : memref<16xi32, #tpu.memory_space<smem>>
    %22 = arith.index_cast %21 : i32 to index
    %c0_4 = arith.constant 0 : index
    %23 = vector.load %arg2[%22, %c0_4] : memref<64x32xf32, #tpu.memory_space<vmem>>, vector<1x32xf32>
    %cst_5 = arith.constant 5.65685415 : f32
    %24 = vector.broadcast %cst_5 : f32 to vector<1x32xf32>
    %25 = arith.mulf %23, %24 : vector<1x32xf32>
    %26 = arith.index_cast %c2_i32 : i32 to index
    %c0_6 = arith.constant 0 : index
    %27 = vector.load %arg3[%26, %c0_6] : memref<8x32xf32, #tpu.memory_space<vmem>>, vector<1x32xf32>
    tpu.vector_store %arg3[%26, %c0_6], %25 {strides = array<i32>} : memref<8x32xf32, #tpu.memory_space<vmem>>, vector<1x32xf32>,
    %c3_i32 = arith.constant 3 : i32
    %28 = arith.addi %0, %c3_i32 : i32
    %29 = arith.index_cast %28 : i32 to index
    %30 = memref.load %arg1[%29] : memref<16xi32, #tpu.memory_space<smem>>
    %31 = arith.index_cast %30 : i32 to index
    %c0_7 = arith.constant 0 : index
    %32 = vector.load %arg2[%31, %c0_7] : memref<64x32xf32, #tpu.memory_space<vmem>>, vector<1x32xf32>
    %cst_8 = arith.constant 5.65685415 : f32
    %33 = vector.broadcast %cst_8 : f32 to vector<1x32xf32>
    %34 = arith.mulf %32, %33 : vector<1x32xf32>
    %35 = arith.index_cast %c3_i32 : i32 to index
    %c0_9 = arith.constant 0 : index
    %36 = vector.load %arg3[%35, %c0_9] : memref<8x32xf32, #tpu.memory_space<vmem>>, vector<1x32xf32>
    tpu.vector_store %arg3[%35, %c0_9], %34 {strides = array<i32>} : memref<8x32xf32, #tpu.memory_space<vmem>>, vector<1x32xf32>,
    %c4_i32 = arith.constant 4 : i32
    %37 = arith.addi %0, %c4_i32 : i32
    %38 = arith.index_cast %37 : i32 to index
    %39 = memref.load %arg1[%38] : memref<16xi32, #tpu.memory_space<smem>>
    %40 = arith.index_cast %39 : i32 to index
    %c0_10 = arith.constant 0 : index
    %41 = vector.load %arg2[%40, %c0_10] : memref<64x32xf32, #tpu.memory_space<vmem>>, vector<1x32xf32>
    %cst_11 = arith.constant 5.65685415 : f32
    %42 = vector.broadcast %cst_11 : f32 to vector<1x32xf32>
    %43 = arith.mulf %41, %42 : vector<1x32xf32>
    %44 = arith.index_cast %c4_i32 : i32 to index
    %c0_12 = arith.constant 0 : index
    %45 = vector.load %arg3[%44, %c0_12] : memref<8x32xf32, #tpu.memory_space<vmem>>, vector<1x32xf32>
    tpu.vector_store %arg3[%44, %c0_12], %43 {strides = array<i32>} : memref<8x32xf32, #tpu.memory_space<vmem>>, vector<1x32xf32>,
    %c5_i32 = arith.constant 5 : i32
    %46 = arith.addi %0, %c5_i32 : i32
    %47 = arith.index_cast %46 : i32 to index
    %48 = memref.load %arg1[%47] : memref<16xi32, #tpu.memory_space<smem>>
    %49 = arith.index_cast %48 : i32 to index
    %c0_13 = arith.constant 0 : index
    %50 = vector.load %arg2[%49, %c0_13] : memref<64x32xf32, #tpu.memory_space<vmem>>, vector<1x32xf32>
    %cst_14 = arith.constant 5.65685415 : f32
    %51 = vector.broadcast %cst_14 : f32 to vector<1x32xf32>
    %52 = arith.mulf %50, %51 : vector<1x32xf32>
    %53 = arith.index_cast %c5_i32 : i32 to index
    %c0_15 = arith.constant 0 : index
    %54 = vector.load %arg3[%53, %c0_15] : memref<8x32xf32, #tpu.memory_space<vmem>>, vector<1x32xf32>
    tpu.vector_store %arg3[%53, %c0_15], %52 {strides = array<i32>} : memref<8x32xf32, #tpu.memory_space<vmem>>, vector<1x32xf32>,
    %c6_i32 = arith.constant 6 : i32
    %55 = arith.addi %0, %c6_i32 : i32
    %56 = arith.index_cast %55 : i32 to index
    %57 = memref.load %arg1[%56] : memref<16xi32, #tpu.memory_space<smem>>
    %58 = arith.index_cast %57 : i32 to index
    %c0_16 = arith.constant 0 : index
    %59 = vector.load %arg2[%58, %c0_16] : memref<64x32xf32, #tpu.memory_space<vmem>>, vector<1x32xf32>
    %cst_17 = arith.constant 5.65685415 : f32
    %60 = vector.broadcast %cst_17 : f32 to vector<1x32xf32>
    %61 = arith.mulf %59, %60 : vector<1x32xf32>
    %62 = arith.index_cast %c6_i32 : i32 to index
    %c0_18 = arith.constant 0 : index
    %63 = vector.load %arg3[%62, %c0_18] : memref<8x32xf32, #tpu.memory_space<vmem>>, vector<1x32xf32>
    tpu.vector_store %arg3[%62, %c0_18], %61 {strides = array<i32>} : memref<8x32xf32, #tpu.memory_space<vmem>>, vector<1x32xf32>,
    %c7_i32 = arith.constant 7 : i32
    %64 = arith.addi %0, %c7_i32 : i32
    %65 = arith.index_cast %64 : i32 to index
    %66 = memref.load %arg1[%65] : memref<16xi32, #tpu.memory_space<smem>>
    %67 = arith.index_cast %66 : i32 to index
    %c0_19 = arith.constant 0 : index
    %68 = vector.load %arg2[%67, %c0_19] : memref<64x32xf32, #tpu.memory_space<vmem>>, vector<1x32xf32>
    %cst_20 = arith.constant 5.65685415 : f32
    %69 = vector.broadcast %cst_20 : f32 to vector<1x32xf32>
    %70 = arith.mulf %68, %69 : vector<1x32xf32>
    %71 = arith.index_cast %c7_i32 : i32 to index
    %c0_21 = arith.constant 0 : index
    %72 = vector.load %arg3[%71, %c0_21] : memref<8x32xf32, #tpu.memory_space<vmem>>, vector<1x32xf32>
    tpu.vector_store %arg3[%71, %c0_21], %70 {strides = array<i32>} : memref<8x32xf32, #tpu.memory_space<vmem>>, vector<1x32xf32>,
    %c8_i32_22 = arith.constant 8 : i32
    return
  }
  func.func @transform_0(%arg0: i32, %arg1: memref<16xi32, #tpu.memory_space<smem>>) -> (i32, i32) {
    %c0_i32 = arith.constant 0 : i32
    %c0_i32_0 = arith.constant 0 : i32
    %c0_i32_1 = arith.constant 0 : i32
    return %c0_i32, %c0_i32_0 : i32, i32
  }
  func.func @transform_1(%arg0: i32, %arg1: memref<16xi32, #tpu.memory_space<smem>>) -> (i32, i32) {
    %c0_i32 = arith.constant 0 : i32
    %c0_i32_0 = arith.constant 0 : i32
    return %arg0, %c0_i32 : i32, i32
  }
}

</mosaic_0001>

<bundles_post_ra>
// kernel: tpu_custom_call.1
= control target key start
LH: loop header
LB: loop body
LE: loop exit
PB: predicated region body
PF: predicated region fallthrough
CT: control target
= control target key end

     0   :  { %s351_s12 = smov [#allocation3]   ;;  %s504_s0 = inlined_call_operand.vmem [shape: s32[16], index: 0, kind: input, shape index: {}]   ;;  %s505_s1 = inlined_call_operand.vmem [shape: f32[64,32], index: 1, kind: input, shape index: {}]   ;;  %s506_s2 = inlined_call_operand.hbm [shape: f32[16,32], index: 2, kind: output, shape index: {}]  }
   0x1   :  { %s8_s11 = sshll.u32 %s504_s0, 4  ;;  %s9_s11 = int_to_ptr.vmem [resolvable:$true] %s8_s11 }
   0x2   :  { %11 = dma.vmem_to_smem %s9_s11, 16, %s351_s12, [#allocation2] }
   0x3   :  { %329 = dma.done.wait [#allocation2], 16 }
   0x4   :  { %330 = vsyncadd [#allocation2], 4294967280 }
   0x5   :  { %14 = sfence }
   0x6   :  { %15 = vsyncpa [#allocation5], 0 }
   0x7   :  { %17 = vsyncpa [#allocation5 + $0x1], 0  ;;  %s370_s13 = smov 0   ;;  %s372_s14 = smov 0  }
   0x8   :  { %s374_s15 = smov 0   ;;  %s376_s16 = smov 0  }
   0x9 LB: > { %s223_s0 = sadd.s32 4294967295, %s349_s16   ;;  %s224_s17 = sadd.s32 4294967294, %s349_s16   ;;  %s349_s16 = sphi %s376_s16, %s516_s16   ;;  %s345_s15 = sphi %s374_s15, %s515_s15   ;;  %s341_s14 = sphi %s372_s14, %s514_s14   ;;  %s337_s13 = sphi %s370_s13, %s513_s13  }
   0xa   : > { %s393_s18 = sadd.s32 1, %s349_s16   ;;  %s51_s19 = sadd.s32 1, %s345_s15 }
   0xb   : > { %s48_s20 = ssub.s32 %s349_s16, %s393_s18  ;;  %p61_p0 = scmp.ne.s32.totalorder %s345_s15, %s341_s14 }
   0xc   : > { %p49_p1 = scmp.eq.s32.totalorder %s48_s20, 0  ;;  %p62_p2 = scmp.eq.s32.totalorder %s223_s0, 1 }
   0xd   : > { %p67_p3 = scmp.ne.s32.totalorder %s341_s14, %s337_s13  ;;  %p68_p4 = scmp.eq.s32.totalorder %s224_s17, 1 }
   0xe   : > { %s403_s21 = scalar_select %p49_p1, %s345_s15, %s51_s19  }
   0xf   : > { %p405_p5 = por %p62_p2, %p61_p0  ;;  %p409_p6 = por %p68_p4, %p67_p3 }
  0x10   : > { %508 = sst [smem:[#allocation8_spill]] %s403_s21  ;;  %p226_p7 = scmp.ge.s32.totalorder %s349_s16, 1 }
  0x11   : > { %p89_p8 = scmp.lt.s32.totalorder %s349_s16, 3 }
  0x13   : > { %p90_p9 = pnand %p226_p7, %p89_p8 }
  0x14   : > { %s507_s24 = sand.u32 (!%p90_p9), 1, %s341_s14   ;;  %s416_s25 = sshll.u32 (!%p90_p9), %s223_s0, 3 }
  0x15   : > { %93 = sbr.rel (%p90_p9) target bundleno = 50 (0x32), region = 24  ;;  %s227_s26 = sshll.u32 (!%p90_p9), %s507_s24, 3 }
  0x16   : > { %s105_s27 = sld [smem:[#allocation3 + %s416_s25]] (!%p90_p9)  ;;  %s111_s28 = sadd.s32 (!%p90_p9), 1, %s416_s25 }
  0x17   : > { %s117_s29 = sadd.s32 (!%p90_p9), 2, %s416_s25  ;;  %s112_s30 = sld [smem:[#allocation3 + %s111_s28]] (!%p90_p9) }
  0x18   : > { %s123_s3 = sadd.s32 (!%p90_p9), 3, %s416_s25  ;;  %s118_s4 = sld [smem:[#allocation3 + %s117_s29]] (!%p90_p9) }
  0x19   : > { %s129_s5 = sadd.s32 (!%p90_p9), 4, %s416_s25  ;;  %s124_s6 = sld [smem:[#allocation3 + %s123_s3]] (!%p90_p9) }
  0x1a   : > { %s135_s7 = sadd.s32 5, %s416_s25  ;;  %s130_s11 = sld [smem:[#allocation3 + %s129_s5]]  ;;  %vm109_vm0 = vcmask 253952  }
  0x1b   : > { %s136_s12 = sld [smem:[#allocation3 + %s135_s7]]  ;;  %s141_s0 = sadd.s32 6, %s416_s25 }
  0x1c   : > { %s106_s10 = scalar_lea.vmem %s505_s1, %s105_s27  ;;  %s142_s17 = sld [smem:[#allocation3 + %s141_s0]] }
  0x1d   : > { %v107_v0 = vld [vmem:[%s106_s10] sm:$0x1]  ;;  %s147_s19 = sadd.s32 7, %s416_s25  ;;  %s113_s28 = scalar_lea.vmem %s505_s1, %s112_s30 }
  0x1e   : > { %v108_v1 = vmul.f32 5.656854, %v107_v0  ;;  %s148_s29 = sld [smem:[#allocation3 + %s147_s19]]  ;;  %s434_s21 = scalar_lea.vmem [#allocation4], %s227_s26  ;;  %v114_v2 = vld [vmem:[%s113_s28] sm:$0x1] }
  0x1f   : > { %s119_s5 = scalar_lea.vmem %s505_s1, %s118_s4  ;;  %v115_v3 = vmul.f32 5.656854, %v114_v2  ;;  %s125_s26 = scalar_lea.vmem %s505_s1, %s124_s6 }
  0x20   : > { %110 = vst.msk [vmem:[%s434_s21] sm:$0x1] %vm109_vm0, %v108_v1  ;;  %v120_v4 = vld [vmem:[%s119_s5] sm:$0x1]  ;;  %s131_s9 = scalar_lea.vmem %s505_s1, %s130_s11  ;;  %s166_s10 = sshll.u32 %s434_s21, 4  ;;  %s167_s10 = int_to_ptr.vmem [resolvable:$true] %s166_s10 }
  0x21   : > { %v121_v5 = vmul.f32 5.656854, %v120_v4  ;;  %v126_v6 = vld [vmem:[%s125_s26] sm:$0x1]  ;;  %116 = vst.msk [vmem:[%s434_s21 + $0x1] sm:$0x1] %vm109_vm0, %v115_v3  ;;  %s137_s19 = scalar_lea.vmem %s505_s1, %s136_s12  ;;  %s164_s3 = scalar_lea.hbm %s506_s2, %s416_s25 }
  0x22   : > { %v127_v7 = vmul.f32 5.656854, %v126_v6  ;;  %v132_v8 = vld [vmem:[%s131_s9] sm:$0x1]  ;;  %s143_s11 = scalar_lea.vmem %s505_s1, %s142_s17  ;;  %s168_s17 = sshll.u32 %s164_s3, 4  ;;  %s169_s17 = int_to_ptr.hbm [resolvable:$true] %s168_s17 }
  0x23   : > { %122 = vst.msk [vmem:[%s434_s21 + $0x2] sm:$0x1] %vm109_vm0, %v121_v5  ;;  %v133_v9 = vmul.f32 5.656854, %v132_v8  ;;  %v138_v10 = vld [vmem:[%s137_s19] sm:$0x1] }
  0x24   : > { %128 = vst.msk [vmem:[%s434_s21 + $0x3] sm:$0x1] %vm109_vm0, %v127_v7  ;;  %v139_v11 = vmul.f32 5.656854, %v138_v10  ;;  %v144_v12 = vld [vmem:[%s143_s11] sm:$0x1]  ;;  %s149_s24 = scalar_lea.vmem %s505_s1, %s148_s29 }
  0x25   : > { %134 = vst.msk [vmem:[%s434_s21 + $0x4] sm:$0x1] %vm109_vm0, %v133_v9  ;;  %v145_v13 = vmul.f32 5.656854, %v144_v12  ;;  %v150_v14 = vld [vmem:[%s149_s24] sm:$0x1] }
  0x26   : > { %140 = vst.msk [vmem:[%s434_s21 + $0x5] sm:$0x1] %vm109_vm0, %v139_v11  ;;  %v151_v15 = vmul.f32 5.656854, %v150_v14  ;;  %s511_s25 = sand.u32 1, %s341_s14   ;;  %s299_s26 = sshra.s32 %s169_s17, 4  ;;  %s300_s26 = int_to_ptr.hbm [resolvable:$true] %s299_s26 }
  0x27   : > { %146 = vst.msk [vmem:[%s434_s21 + $0x6] sm:$0x1] %vm109_vm0, %v145_v13  ;;  %s154_s30 = scalar_lea.sflag [#allocation5], %s511_s25  ;;  %s301_s29 = scalar_lea.hbm %s300_s26, 8 }
  0x28   : > { %152 = vst.msk [vmem:[%s434_s21 + $0x7] sm:$0x1] %vm109_vm0, %v151_v15  ;;  %p302_p10 = scmp.ne.s32.totalorder %s300_s26, %s301_s29  ;;  %s305_s9 = scalar_lea.hbm %s506_s2, 16 }
  0x29   : > { %p306_p13 = scmp.lt.s32.totalorder %s300_s26, %s506_s2  ;;  %p307_p0 = scmp.lt.s32.totalorder %s305_s9, %s301_s29 }
  0x2a   : > { %p303_p11 = pnand %p302_p10, %p405_p5 }
  0x2b   : > { %p308_p1 = por %p307_p0, %p306_p13 }
  0x2c   : > { %p304_p12 = pneg %p303_p11 }
  0x2e   : > { %p309_p2 = pnand %p308_p1, %p304_p12 }
  0x30   : > { %312 = shalt.err (!%p309_p2)
}
  0x31   : > { %233 = dma.vmem_to_hbm [thread:$0]  (%p405_p5), %s167_s10, 128, %s169_s17, %s154_s30  }
  0x32 PF: > { %p239_p3 = scmp.ge.s32.totalorder %s349_s16, 2  ;;  %s180_s21 = sand.u32 1, %s337_s13  }
  0x33   : > { %s181_s19 = scalar_lea.sflag [#allocation5], %s180_s21 }
  0x34   : > { %p236_p4 = pnand %p239_p3, %p409_p6 }
  0x36   : > { %p237_p7 = pneg %p236_p4 }
  0x38   : > { %332 = dma.done.wait (%p237_p7), %s181_s19, 128  }
  0x39   : > { %334 = vsyncadd (%p237_p7), %s181_s19, 4294967168  ;;  %s512_s6 = sld [smem:[#allocation8_spill]]  ;;  %p20_p8 = scmp.ge.s32.totalorder %s393_s18, 4  }
  0x3a   : > { %s513_s13 = smov %s341_s14  ;;  %s514_s14 = smov %s345_s15 }
  0x3b   : > { %s516_s16 = smov %s393_s18  ;;  %22 = sbr.rel (!%p20_p8) target bundleno = 9 (0x9), region = 64 }
  0x3f   : > { %s515_s15 = smov %s512_s6 }
  0x40   :  { %187 = vsyncpa [#allocation5], 1 }
  0x41   :  { %189 = vsyncpa [#allocation5 + $0x1], 1 }

</bundles_post_ra>
